<compile_context>
chip_gen: v7x
topology: tpu7x:2x2x1
jax: 0.10.0
libtpu: 0.0.40
codegen_flags: <defaults>
</compile_context>

<pallas_src>
import functools

import jax
import jax.numpy as jnp
from jax.experimental import pallas as pl
from jax.experimental.pallas import tpu as pltpu


def _rtfm_kernel(x_ref,
                 w1_ref, b1_ref, w2_ref, b2_ref,
                 wc1_ref, bc1_ref, wc2_ref, bc2_ref, wc3_ref, bc3_ref,
                 score_ref):
    """Fused MLP: embedding (Linear-ReLU-Linear) + classifier (3 Linears + Sigmoid)."""
    x = x_ref[...].astype(jnp.bfloat16)                                # (tm, dim)

    # video_embedding: Dropout(id) -> Linear -> ReLU -> Dropout(id) -> Linear
    h = jnp.dot(x, w1_ref[...], preferred_element_type=jnp.float32) + b1_ref[...]
    h = jnp.maximum(h, 0.0).astype(jnp.bfloat16)
    feat = jnp.dot(h, w2_ref[...], preferred_element_type=jnp.float32) + b2_ref[...]

    # video_classifier: Linear -> ReLU -> Linear -> ReLU -> Linear -> Sigmoid
    c1 = jnp.dot(feat.astype(jnp.bfloat16), wc1_ref[...],
                 preferred_element_type=jnp.float32) + bc1_ref[...]
    c1 = jnp.maximum(c1, 0.0).astype(jnp.bfloat16)                     # (tm, dim//4)
    c2 = jnp.dot(c1, wc2_ref[...], preferred_element_type=jnp.float32) + bc2_ref[...]
    c2 = jnp.maximum(c2, 0.0)                                          # (tm, dim//16) f32

    # Final Linear(dim//16 -> 1): VPU multiply + lane reduction (skip 1-wide MXU op).
    logit = jnp.sum(c2 * wc3_ref[...], axis=-1, keepdims=True) + bc3_ref[...]  # (tm, 1)

    # Sigmoid via exp + approximate reciprocal; both ride the otherwise-idle EUP slot.
    score = pl.reciprocal(1.0 + jnp.exp(-logit), approx=True)
    score_ref[...] = jnp.clip(score, 0.0, 1.0)


def _round_up(x, m):
    return ((x + m - 1) // m) * m


def rtfm_forward(video_feat, params, *, tm=512):
    """video_feat: (B, N, T, C) float32.  Returns {'snippet_score': (B, T)}."""
    B, N, T, C = video_feat.shape
    dim = C
    d4, d16 = dim // 4, dim // 16

    M = B * N * T
    tm = min(tm, max(8, _round_up(M, 8)))      # tm multiple of 8, no bigger than needed
    M_pad = _round_up(M, tm)

    x = video_feat.reshape(M, C).astype(jnp.float32)
    if M_pad != M:                             # pad rows; results sliced off below
        x = jnp.pad(x, ((0, M_pad - M), (0, 0)))

    # bf16 weights: halves weight DMA / VMEM residency; accumulation stays f32.
    w1 = params["w1"].astype(jnp.bfloat16)
    w2 = params["w2"].astype(jnp.bfloat16)
    wc1 = params["wc1"].astype(jnp.bfloat16)
    wc2 = params["wc2"].astype(jnp.bfloat16)

    full = lambda i: (0, 0)
    row = lambda i: (i, 0)

    flops = 2 * M_pad * (dim * dim + dim * dim + dim * d4 + d4 * d16 + d16)
    bytes_accessed = (M_pad * dim * 4 + M_pad * 4                       # x read + score write
                      + (2 * dim * dim + dim * d4 + d4 * d16) * 2       # bf16 weights
                      + (2 * dim + d4 + 2 * d16 + 1) * 4)               # f32 biases + wc3

    score = pl.pallas_call(
        _rtfm_kernel,
        out_shape=jax.ShapeDtypeStruct((M_pad, 1), jnp.float32),
        grid_spec=pltpu.PrefetchScalarGridSpec(
            num_scalar_prefetch=0,
            grid=(M_pad // tm,),
            in_specs=[
                pl.BlockSpec((tm, dim), row),        # x rows
                pl.BlockSpec((dim, dim), full),      # W1 (bf16)
                pl.BlockSpec((1, dim), full),        # b1
                pl.BlockSpec((dim, dim), full),      # W2 (bf16)
                pl.BlockSpec((1, dim), full),        # b2
                pl.BlockSpec((dim, d4), full),       # Wc1 (bf16)
                pl.BlockSpec((1, d4), full),         # bc1
                pl.BlockSpec((d4, d16), full),       # Wc2 (bf16)
                pl.BlockSpec((1, d16), full),        # bc2
                pl.BlockSpec((1, d16), full),        # Wc3 row (f32)
                pl.BlockSpec((1, 1), full),          # bc3
            ],
            out_specs=pl.BlockSpec((tm, 1), row),    # sigmoid scores
        ),
        compiler_params=pltpu.CompilerParams(
            dimension_semantics=("parallel",),
            vmem_limit_bytes=64 * 1024 * 1024),
        cost_estimate=pl.CostEstimate(
            flops=flops, transcendentals=2 * M_pad, bytes_accessed=bytes_accessed),
    )(x,
      w1, params["b1"], w2, params["b2"],
      wc1, params["bc1"], wc2, params["bc2"],
      params["wc3"], params["bc3"])

    # video_score.view(B, N, -1).mean(1)  -> (B, T)   (cheap glue in plain JAX)
    snippet_score = score[:M, 0].reshape(B, N, T).mean(axis=1)
    return {"snippet_score": snippet_score}


def rtfm_reference(video_feat, params):
    """Pure-JAX f32 reference for the labels=None forward."""
    B, N, T, C = video_feat.shape
    x = video_feat.reshape(-1, C)
    h = jnp.maximum(x @ params["w1"] + params["b1"], 0.0)
    feat = h @ params["w2"] + params["b2"]
    c1 = jnp.maximum(feat @ params["wc1"] + params["bc1"], 0.0)
    c2 = jnp.maximum(c1 @ params["wc2"] + params["bc2"], 0.0)
    logit = c2 @ params["wc3"].T + params["bc3"]
    score = jax.nn.sigmoid(logit)
    return score.reshape(B, N, T).mean(axis=1)


def init_params(key, dim):
    """Deterministic init mimicking nn.Linear (uniform +-1/sqrt(fan_in)).
    Weights stored pre-transposed as (in, out); final layer as a (1, d16) row."""
    d4, d16 = dim // 4, dim // 16
    shapes = {
        "w1": (dim, dim), "b1": (1, dim),
        "w2": (dim, dim), "b2": (1, dim),
        "wc1": (dim, d4), "bc1": (1, d4),
        "wc2": (d4, d16), "bc2": (1, d16),
        "wc3": (1, d16), "bc3": (1, 1),
    }
    fan_in = {
        "w1": dim, "b1": dim, "w2": dim, "b2": dim,
        "wc1": dim, "bc1": dim, "wc2": d4, "bc2": d4,
        "wc3": d16, "bc3": d16,
    }
    params = {}
    keys = jax.random.split(key, len(shapes))
    for k_rng, (name, shp) in zip(keys, sorted(shapes.items())):
        bound = 1.0 / (fan_in[name] ** 0.5)
        params[name] = jax.random.uniform(
            k_rng, shp, jnp.float32, minval=-bound, maxval=bound)
    return params


if __name__ == "__main__":
    # Small shapes consistent with forward: video_feat (B, N, T, C), dim=C.
    B, N, T, dim = 2, 2, 8, 128
    key = jax.random.PRNGKey(0)
    k_x, k_p = jax.random.split(key)

    video_feat = jax.random.normal(k_x, (B, N, T, dim), jnp.float32)
    params = init_params(k_p, dim)

    out = jax.jit(functools.partial(rtfm_forward, params=params))(video_feat)
    score = jax.block_until_ready(out["snippet_score"])

    ref = rtfm_reference(video_feat, params)

    assert score.shape == (B, T)
    assert bool(jnp.all(jnp.isfinite(score)))
    assert bool(jnp.all((score >= 0.0) & (score <= 1.0)))        # sigmoid range
    max_err = float(jnp.max(jnp.abs(score - ref)))
    assert max_err < 5e-2, max_err                               # bf16-matmul tolerance
    print("KERNEL_OK")
</pallas_src>

<mosaic_0001>
module attributes {stable_mosaic.version = 11 : i64} {
  func.func @_rtfm_kernel(%arg0: i32, %arg1: memref<32x128xf32, #tpu.memory_space<vmem>>, %arg2: memref<128x128xbf16, #tpu.memory_space<vmem>>, %arg3: memref<1x128xf32, #tpu.memory_space<vmem>>, %arg4: memref<128x128xbf16, #tpu.memory_space<vmem>>, %arg5: memref<1x128xf32, #tpu.memory_space<vmem>>, %arg6: memref<128x32xbf16, #tpu.memory_space<vmem>>, %arg7: memref<1x32xf32, #tpu.memory_space<vmem>>, %arg8: memref<32x8xbf16, #tpu.memory_space<vmem>>, %arg9: memref<1x8xf32, #tpu.memory_space<vmem>>, %arg10: memref<1x8xf32, #tpu.memory_space<vmem>>, %arg11: memref<1x1xf32, #tpu.memory_space<vmem>>, %arg12: memref<32x1xf32, #tpu.memory_space<vmem>>) attributes {dimension_semantics = [#tpu.dimension_semantics<parallel>], iteration_bounds = array<i64: 1>, scalar_prefetch = 0 : i64, scratch_operands = 0 : i64, tpu.core_type = #tpu.core_type<tc>, window_params = [{transform_indices = @transform_0, window_bounds = array<i64: 32, 128>}, {pipeline_mode = #tpu.pipeline_mode<synchronous>, transform_indices = @transform_1, window_bounds = array<i64: 128, 128>}, {pipeline_mode = #tpu.pipeline_mode<synchronous>, transform_indices = @transform_2, window_bounds = array<i64: 1, 128>}, {pipeline_mode = #tpu.pipeline_mode<synchronous>, transform_indices = @transform_3, window_bounds = array<i64: 128, 128>}, {pipeline_mode = #tpu.pipeline_mode<synchronous>, transform_indices = @transform_4, window_bounds = array<i64: 1, 128>}, {pipeline_mode = #tpu.pipeline_mode<synchronous>, transform_indices = @transform_5, window_bounds = array<i64: 128, 32>}, {pipeline_mode = #tpu.pipeline_mode<synchronous>, transform_indices = @transform_6, window_bounds = array<i64: 1, 32>}, {pipeline_mode = #tpu.pipeline_mode<synchronous>, transform_indices = @transform_7, window_bounds = array<i64: 32, 8>}, {pipeline_mode = #tpu.pipeline_mode<synchronous>, transform_indices = @transform_8, window_bounds = array<i64: 1, 8>}, {pipeline_mode = #tpu.pipeline_mode<synchronous>, transform_indices = @transform_9, window_bounds = array<i64: 1, 8>}, {pipeline_mode = #tpu.pipeline_mode<synchronous>, transform_indices = @transform_10, window_bounds = array<i64: 1, 1>}, {transform_indices = @transform_11, window_bounds = array<i64: 32, 1>}]} {
    %c0 = arith.constant 0 : index
    %c0_0 = arith.constant 0 : index
    %0 = vector.load %arg1[%c0, %c0_0] : memref<32x128xf32, #tpu.memory_space<vmem>>, vector<32x128xf32>
    %1 = arith.truncf %0 : vector<32x128xf32> to vector<32x128xbf16>
    %c0_1 = arith.constant 0 : index
    %c0_2 = arith.constant 0 : index
    %2 = vector.load %arg2[%c0_1, %c0_2] : memref<128x128xbf16, #tpu.memory_space<vmem>>, vector<128x128xbf16>
    %cst = arith.constant dense<0.000000e+00> : vector<32x128xf32>
    %3 = tpu.matmul %1, %2, %cst {dimension_numbers = #tpu.dot_dimension_numbers<[1], [0], [0], [1], [0, 0, 1, 1], [], []>} : vector<32x128xbf16>, vector<128x128xbf16>, vector<32x128xf32> -> vector<32x128xf32>
    %c0_3 = arith.constant 0 : index
    %c0_4 = arith.constant 0 : index
    %4 = vector.load %arg3[%c0_3, %c0_4] : memref<1x128xf32, #tpu.memory_space<vmem>>, vector<1x128xf32>
    %5 = vector.broadcast %4 : vector<1x128xf32> to vector<32x128xf32>
    %6 = arith.addf %3, %5 : vector<32x128xf32>
    %cst_5 = arith.constant 0.000000e+00 : f32
    %7 = vector.broadcast %cst_5 : f32 to vector<32x128xf32>
    %8 = arith.maximumf %6, %7 : vector<32x128xf32>
    %9 = arith.truncf %8 : vector<32x128xf32> to vector<32x128xbf16>
    %c0_6 = arith.constant 0 : index
    %c0_7 = arith.constant 0 : index
    %10 = vector.load %arg4[%c0_6, %c0_7] : memref<128x128xbf16, #tpu.memory_space<vmem>>, vector<128x128xbf16>
    %cst_8 = arith.constant dense<0.000000e+00> : vector<32x128xf32>
    %11 = tpu.matmul %9, %10, %cst_8 {dimension_numbers = #tpu.dot_dimension_numbers<[1], [0], [0], [1], [0, 0, 1, 1], [], []>} : vector<32x128xbf16>, vector<128x128xbf16>, vector<32x128xf32> -> vector<32x128xf32>
    %c0_9 = arith.constant 0 : index
    %c0_10 = arith.constant 0 : index
    %12 = vector.load %arg5[%c0_9, %c0_10] : memref<1x128xf32, #tpu.memory_space<vmem>>, vector<1x128xf32>
    %13 = vector.broadcast %12 : vector<1x128xf32> to vector<32x128xf32>
    %14 = arith.addf %11, %13 : vector<32x128xf32>
    %15 = arith.truncf %14 : vector<32x128xf32> to vector<32x128xbf16>
    %c0_11 = arith.constant 0 : index
    %c0_12 = arith.constant 0 : index
    %16 = vector.load %arg6[%c0_11, %c0_12] : memref<128x32xbf16, #tpu.memory_space<vmem>>, vector<128x32xbf16>
    %cst_13 = arith.constant dense<0.000000e+00> : vector<32x32xf32>
    %17 = tpu.matmul %15, %16, %cst_13 {dimension_numbers = #tpu.dot_dimension_numbers<[1], [0], [0], [1], [0, 0, 1, 1], [], []>} : vector<32x128xbf16>, vector<128x32xbf16>, vector<32x32xf32> -> vector<32x32xf32>
    %c0_14 = arith.constant 0 : index
    %c0_15 = arith.constant 0 : index
    %18 = vector.load %arg7[%c0_14, %c0_15] : memref<1x32xf32, #tpu.memory_space<vmem>>, vector<1x32xf32>
    %19 = vector.broadcast %18 : vector<1x32xf32> to vector<32x32xf32>
    %20 = arith.addf %17, %19 : vector<32x32xf32>
    %cst_16 = arith.constant 0.000000e+00 : f32
    %21 = vector.broadcast %cst_16 : f32 to vector<32x32xf32>
    %22 = arith.maximumf %20, %21 : vector<32x32xf32>
    %23 = arith.truncf %22 : vector<32x32xf32> to vector<32x32xbf16>
    %c0_17 = arith.constant 0 : index
    %c0_18 = arith.constant 0 : index
    %24 = vector.load %arg8[%c0_17, %c0_18] : memref<32x8xbf16, #tpu.memory_space<vmem>>, vector<32x8xbf16>
    %cst_19 = arith.constant dense<0.000000e+00> : vector<32x8xf32>
    %25 = tpu.matmul %23, %24, %cst_19 {dimension_numbers = #tpu.dot_dimension_numbers<[1], [0], [0], [1], [0, 0, 1, 1], [], []>} : vector<32x32xbf16>, vector<32x8xbf16>, vector<32x8xf32> -> vector<32x8xf32>
    %c0_20 = arith.constant 0 : index
    %c0_21 = arith.constant 0 : index
    %26 = vector.load %arg9[%c0_20, %c0_21] : memref<1x8xf32, #tpu.memory_space<vmem>>, vector<1x8xf32>
    %27 = vector.broadcast %26 : vector<1x8xf32> to vector<32x8xf32>
    %28 = arith.addf %25, %27 : vector<32x8xf32>
    %cst_22 = arith.constant 0.000000e+00 : f32
    %29 = vector.broadcast %cst_22 : f32 to vector<32x8xf32>
    %30 = arith.maximumf %28, %29 : vector<32x8xf32>
    %c0_23 = arith.constant 0 : index
    %c0_24 = arith.constant 0 : index
    %31 = vector.load %arg10[%c0_23, %c0_24] : memref<1x8xf32, #tpu.memory_space<vmem>>, vector<1x8xf32>
    %32 = vector.broadcast %31 : vector<1x8xf32> to vector<32x8xf32>
    %33 = arith.mulf %30, %32 : vector<32x8xf32>
    %cst_25 = arith.constant dense<0.000000e+00> : vector<32xf32>
    %34 = vector.multi_reduction <add>, %33, %cst_25 [1] : vector<32x8xf32> to vector<32xf32>
    %35 = vector.shape_cast %34 : vector<32xf32> to vector<32x1xf32>
    %c0_26 = arith.constant 0 : index
    %c0_27 = arith.constant 0 : index
    %36 = vector.load %arg11[%c0_26, %c0_27] : memref<1x1xf32, #tpu.memory_space<vmem>>, vector<1x1xf32>
    %37 = vector.broadcast %36 : vector<1x1xf32> to vector<32x1xf32>
    %38 = arith.addf %35, %37 : vector<32x1xf32>
    %cst_28 = arith.constant 0.000000e+00 : f32
    %39 = vector.broadcast %cst_28 : f32 to vector<32x1xf32>
    %40 = arith.subf %39, %38 : vector<32x1xf32>
    %41 = math.exp %40 : vector<32x1xf32>
    %cst_29 = arith.constant 1.000000e+00 : f32
    %42 = vector.broadcast %cst_29 : f32 to vector<32x1xf32>
    %43 = arith.addf %42, %41 : vector<32x1xf32>
    %44 = tpu.reciprocal %43 {approx = true} : vector<32x1xf32> -> vector<32x1xf32>
    %cst_30 = arith.constant 0.000000e+00 : f32
    %cst_31 = arith.constant 1.000000e+00 : f32
    %45 = vector.broadcast %cst_30 : f32 to vector<32x1xf32>
    %46 = arith.maximumf %45, %44 : vector<32x1xf32>
    %47 = vector.broadcast %cst_31 : f32 to vector<32x1xf32>
    %48 = arith.minimumf %47, %46 : vector<32x1xf32>
    %c0_32 = arith.constant 0 : index
    %c0_33 = arith.constant 0 : index
    %49 = vector.load %arg12[%c0_32, %c0_33] : memref<32x1xf32, #tpu.memory_space<vmem>>, vector<32x1xf32>
    tpu.vector_store %arg12[%c0_32, %c0_33], %48 {strides = array<i32>} : memref<32x1xf32, #tpu.memory_space<vmem>>, vector<32x1xf32>,
    return
  }
  func.func @transform_0(%arg0: i32) -> (i32, i32) {
    %c0_i32 = arith.constant 0 : i32
    %c0_i32_0 = arith.constant 0 : i32
    return %arg0, %c0_i32 : i32, i32
  }
  func.func @transform_1(%arg0: i32) -> (i32, i32) {
    %c0_i32 = arith.constant 0 : i32
    %c0_i32_0 = arith.constant 0 : i32
    %c0_i32_1 = arith.constant 0 : i32
    return %c0_i32, %c0_i32_0 : i32, i32
  }
  func.func @transform_2(%arg0: i32) -> (i32, i32) {
    %c0_i32 = arith.constant 0 : i32
    %c0_i32_0 = arith.constant 0 : i32
    %c0_i32_1 = arith.constant 0 : i32
    return %c0_i32, %c0_i32_0 : i32, i32
  }
  func.func @transform_3(%arg0: i32) -> (i32, i32) {
    %c0_i32 = arith.constant 0 : i32
    %c0_i32_0 = arith.constant 0 : i32
    %c0_i32_1 = arith.constant 0 : i32
    return %c0_i32, %c0_i32_0 : i32, i32
  }
  func.func @transform_4(%arg0: i32) -> (i32, i32) {
    %c0_i32 = arith.constant 0 : i32
    %c0_i32_0 = arith.constant 0 : i32
    %c0_i32_1 = arith.constant 0 : i32
    return %c0_i32, %c0_i32_0 : i32, i32
  }
  func.func @transform_5(%arg0: i32) -> (i32, i32) {
    %c0_i32 = arith.constant 0 : i32
    %c0_i32_0 = arith.constant 0 : i32
    %c0_i32_1 = arith.constant 0 : i32
    return %c0_i32, %c0_i32_0 : i32, i32
  }
  func.func @transform_6(%arg0: i32) -> (i32, i32) {
    %c0_i32 = arith.constant 0 : i32
    %c0_i32_0 = arith.constant 0 : i32
    %c0_i32_1 = arith.constant 0 : i32
    return %c0_i32, %c0_i32_0 : i32, i32
  }
  func.func @transform_7(%arg0: i32) -> (i32, i32) {
    %c0_i32 = arith.constant 0 : i32
    %c0_i32_0 = arith.constant 0 : i32
    %c0_i32_1 = arith.constant 0 : i32
    return %c0_i32, %c0_i32_0 : i32, i32
  }
  func.func @transform_8(%arg0: i32) -> (i32, i32) {
    %c0_i32 = arith.constant 0 : i32
    %c0_i32_0 = arith.constant 0 : i32
    %c0_i32_1 = arith.constant 0 : i32
    return %c0_i32, %c0_i32_0 : i32, i32
  }
  func.func @transform_9(%arg0: i32) -> (i32, i32) {
    %c0_i32 = arith.constant 0 : i32
    %c0_i32_0 = arith.constant 0 : i32
    %c0_i32_1 = arith.constant 0 : i32
    return %c0_i32, %c0_i32_0 : i32, i32
  }
  func.func @transform_10(%arg0: i32) -> (i32, i32) {
    %c0_i32 = arith.constant 0 : i32
    %c0_i32_0 = arith.constant 0 : i32
    %c0_i32_1 = arith.constant 0 : i32
    return %c0_i32, %c0_i32_0 : i32, i32
  }
  func.func @transform_11(%arg0: i32) -> (i32, i32) {
    %c0_i32 = arith.constant 0 : i32
    %c0_i32_0 = arith.constant 0 : i32
    return %arg0, %c0_i32 : i32, i32
  }
}

</mosaic_0001>

<bundles_post_ra>
// kernel: squeeze.1
= control target key start
LH: loop header
LB: loop body
LE: loop exit
PB: predicated region body
PF: predicated region fallthrough
CT: control target
= control target key end

     0   :  { %vm7_vm0 = vcmask 64512   ;;  %s43_s8 = smov 104   ;;  %s44_s9 = smov 112   ;;  %s68_s0 = inlined_call_operand.vmem [shape: f32[32], index: 0, kind: input, shape index: {}]   ;;  %s69_s1 = inlined_call_operand.vmem [shape: f32[2,2,8], index: 1, kind: output, shape index: {}]  }
   0x1   :  { %v4_v0 = vld [vmem:[%s68_s0] sm:$0x1]  ;;  %s42_s0 = smov 120  }
   0x2   :  { %5 = vst [vmem:[#allocation1] sm:$0x1] %v4_v0 }
   0x9   :  { %v9_v1 = vld [vmem:[#allocation1] sm:$0x1]  }
   0xa   :  { %v21_v2 = vld [vmem:[#allocation1] sm:$0x1]   ;;  %10 = vrot.lane.b32.xlu0 %v9_v1, %s42_s0 }
   0xb   :  { %22 = vrot.lane.b32.xlu1 %v21_v2, %s43_s8  ;;  %v6_v3 = vld [vmem:[#allocation1] sm:$0x1]  }
   0xc   :  { %v15_v4 = vld [vmem:[#allocation1] sm:$0x1]   ;;  %8 = vst.msk [vmem:[#allocation0] sm:$0x1] %vm7_vm0, %v6_v3  }
   0xe   :  { %16 = vrot.lane.b32.xlu0 %v15_v4, %s44_s9 }
  0x7c   :  { %v11_v5 = vpop.permute.xlu0 %10  }
  0x7d   :  { %v23_v6 = vpop.permute.xlu1 %22   ;;  %14 = vst.msk [vmem:[#allocation0 + $0x1] sm:$0x1] %vm7_vm0, %v11_v5  }
  0x7e   :  { %26 = vst.msk [vmem:[#allocation0 + $0x9] sm:$0x1] %vm7_vm0, %v23_v6  }
  0x80   :  { %v17_v7 = vpop.permute.xlu0 %16  }
  0x81   :  { %20 = vst.msk [vmem:[#allocation0 + $0x8] sm:$0x1] %vm7_vm0, %v17_v7  }
  0x84   :  { %v30_v8 = vld [vmem:[#allocation0] sm:$0x3] }
  0x85   :  { %32 = vst [vmem:[%s69_s1] sm:$0x3] %v30_v8 }
  0x88   :  { %v34_v9 = vld [vmem:[#allocation0 + $0x8] sm:$0x3] }
  0x89   :  { %38 = vst [vmem:[%s69_s1 + $0x2] sm:$0x3] %v34_v9 }

// kernel: rtfm_forward.1
= control target key start
LH: loop header
LB: loop body
LE: loop exit
PB: predicated region body
PF: predicated region fallthrough
CT: control target
= control target key end

     0   :  { %s1398_s0 = inlined_call_operand.hbm [shape: f32[32,128], index: 0, kind: input, shape index: {}]   ;;  %s1399_s1 = inlined_call_operand.hbm [shape: bf16[128,128], index: 1, kind: input, shape index: {}]   ;;  %s1400_s2 = inlined_call_operand.hbm [shape: f32[1,128], index: 2, kind: input, shape index: {}]   ;;  %s1401_s3 = inlined_call_operand.hbm [shape: bf16[128,128], index: 3, kind: input, shape index: {}]   ;;  %s1402_s4 = inlined_call_operand.hbm [shape: f32[1,128], index: 4, kind: input, shape index: {}]   ;;  %s1403_s5 = inlined_call_operand.hbm [shape: bf16[128,32], index: 5, kind: input, shape index: {}]   ;;  %s1404_s6 = inlined_call_operand.hbm [shape: f32[1,32], index: 6, kind: input, shape index: {}]   ;;  %s1405_s7 = inlined_call_operand.hbm [shape: bf16[32,8], index: 7, kind: input, shape index: {}]   ;;  %s1406_s8 = inlined_call_operand.hbm [shape: f32[1,8], index: 8, kind: input, shape index: {}]   ;;  %s1407_s9 = inlined_call_operand.hbm [shape: f32[1,8], index: 9, kind: input, shape index: {}]   ;;  %s1408_s10 = inlined_call_operand.<no memory space> [shape: f32[1,1], index: 10, kind: input, shape index: {}]   ;;  %s1409_s11 = inlined_call_operand.hbm [shape: f32[32,1], index: 11, kind: output, shape index: {}]  }
   0x1   :  { %v16_v0 = vstv %s1408_s10 }
   0x2   :  { %17 = vst [vmem:[#allocation2] sm:$0x1] %v16_v0 }
   0x3   :  { %18 = vsyncpa [#allocation4], 0 }
   0x4   :  { %19 = vsyncpa [#allocation7], 0 }
   0x5   :  { %20 = vsyncpa [#allocation10], 0 }
   0x6   :  { %21 = vsyncpa [#allocation13], 0 }
   0x7   :  { %22 = vsyncpa [#allocation16], 0 }
   0x8   :  { %23 = vsyncpa [#allocation19], 0 }
   0x9   :  { %24 = vsyncpa [#allocation5], 0  ;;  %s1170_s19 = smov [#allocation6]   ;;  %s914_s23 = scalar_lea.hbm %s1399_s1, 1024 }
   0xa   :  { %s42_s20 = sshll.u32 %s1170_s19, 4  ;;  %p915_p0 = scmp.ne.s32.totalorder %s1399_s1, %s914_s23  ;;  %s43_s20 = int_to_ptr.vmem [resolvable:$true] %s42_s20 }
   0xb   :  { %p918_p1 = scmp.lt.u32.totalorder %s914_s23, %s1399_s1 }
   0xd   :  { %p920_p2 = pnand %p918_p1, %p915_p0 }
   0xf   :  { %923 = shalt.err (!%p920_p2)
}
  0x10   :  { %s924_s27 = scalar_lea.vmem %s43_s20, 1024  ;;  %p929_p4 = scmp.lt.s32.totalorder %s43_s20, %s43_s20 }
  0x11   :  { %p925_p3 = scmp.ne.s32.totalorder %s43_s20, %s924_s27  ;;  %p930_p5 = scmp.lt.s32.totalorder %s924_s27, %s924_s27 }
  0x13   :  { %p931_p6 = por %p930_p5, %p929_p4 }
  0x15   :  { %p932_p7 = pnand %p931_p6, %p925_p3 }
  0x17   :  { %935 = shalt.err (!%p932_p7)
}
  0x18   :  { %s1171_s28 = smov 64   ;;  %s1172_s29 = smov 4  }
  0x19   :  { %48 = dma.hbm_to_vmem [thread:$0]  %s1399_s1, 1024, %s43_s20, [#allocation7], %s1171_s28, %s1171_s28, %s1172_s29  }
  0x1a   :  { %s1173_s13 = smov [#allocation9]   ;;  %s1174_s15 = smov [#allocation12]  }
  0x1b   :  { %s64_s14 = sshll.u32 %s1173_s13, 4  ;;  %s86_s16 = sshll.u32 %s1174_s15, 4  ;;  %s65_s14 = int_to_ptr.vmem [resolvable:$true] %s64_s14  ;;  %s87_s16 = int_to_ptr.vmem [resolvable:$true] %s86_s16 }
  0x1c   :  { %s936_s19 = scalar_lea.hbm %s1401_s3, 1024 }
  0x1d   :  { %p937_p8 = scmp.ne.s32.totalorder %s1401_s3, %s936_s19  ;;  %p940_p9 = scmp.lt.u32.totalorder %s936_s19, %s1401_s3 }
  0x1f   :  { %p942_p10 = pnand %p940_p9, %p937_p8 }
  0x21   :  { %945 = shalt.err (!%p942_p10)
}
  0x22   :  { %s946_s1 = scalar_lea.vmem %s65_s14, 1024  ;;  %p951_p12 = scmp.lt.s32.totalorder %s65_s14, %s65_s14 }
  0x23   :  { %p947_p11 = scmp.ne.s32.totalorder %s65_s14, %s946_s1  ;;  %p952_p13 = scmp.lt.s32.totalorder %s946_s1, %s946_s1 }
  0x25   :  { %p953_p0 = por %p952_p13, %p951_p12 }
  0x27   :  { %p954_p1 = pnand %p953_p0, %p947_p11 }
  0x29   :  { %957 = shalt.err (!%p954_p1)
}
  0x2a   :  { %70 = dma.hbm_to_vmem [thread:$0]  %s1401_s3, 1024, %s65_s14, [#allocation10], %s1171_s28, %s1171_s28, %s1172_s29  }
  0x2b   :  { %s958_s27 = scalar_lea.hbm %s1403_s5, 1024 }
  0x2c   :  { %p959_p2 = scmp.ne.s32.totalorder %s1403_s5, %s958_s27  ;;  %p962_p3 = scmp.lt.u32.totalorder %s958_s27, %s1403_s5 }
  0x2e   :  { %p964_p4 = pnand %p962_p3, %p959_p2 }
  0x30   :  { %967 = shalt.err (!%p964_p4)
}
  0x31   :  { %s968_s17 = scalar_lea.vmem %s87_s16, 1024  ;;  %p973_p6 = scmp.lt.s32.totalorder %s87_s16, %s87_s16 }
  0x32   :  { %p969_p5 = scmp.ne.s32.totalorder %s87_s16, %s968_s17  ;;  %p974_p7 = scmp.lt.s32.totalorder %s968_s17, %s968_s17 }
  0x34   :  { %p975_p8 = por %p974_p7, %p973_p6 }
  0x36   :  { %p976_p9 = pnand %p975_p8, %p969_p5 }
  0x38   :  { %979 = shalt.err (!%p976_p9)
}
  0x39   :  { %92 = dma.hbm_to_vmem [thread:$0]  %s1403_s5, 1024, %s87_s16, [#allocation13], %s1171_s28, %s1171_s28, %s1172_s29  }
  0x3a   :  { %s1175_s18 = smov [#allocation15]   ;;  %s1176_s21 = smov [#allocation3]  }
  0x3b   :  { %s108_s19 = sshll.u32 %s1175_s18, 4  ;;  %s30_s22 = sshll.u32 %s1176_s21, 4  ;;  %s109_s19 = int_to_ptr.vmem [resolvable:$true] %s108_s19  ;;  %s31_s22 = int_to_ptr.vmem [resolvable:$true] %s30_s22 }
  0x3c   :  { %s980_s1 = scalar_lea.hbm %s1405_s7, 256 }
  0x3d   :  { %p981_p10 = scmp.ne.s32.totalorder %s1405_s7, %s980_s1  ;;  %p984_p11 = scmp.lt.u32.totalorder %s980_s1, %s1405_s7 }
  0x3f   :  { %p986_p12 = pnand %p984_p11, %p981_p10 }
  0x41   :  { %989 = shalt.err (!%p986_p12)
}
  0x42   :  { %s990_s5 = scalar_lea.vmem %s109_s19, 256  ;;  %p995_p0 = scmp.lt.s32.totalorder %s109_s19, %s109_s19 }
  0x43   :  { %p991_p13 = scmp.ne.s32.totalorder %s109_s19, %s990_s5  ;;  %p996_p1 = scmp.lt.s32.totalorder %s990_s5, %s990_s5 }
  0x45   :  { %p997_p2 = por %p996_p1, %p995_p0 }
  0x47   :  { %p998_p3 = pnand %p997_p2, %p991_p13 }
  0x49   :  { %1001 = shalt.err (!%p998_p3)
}
  0x4a   :  { %114 = dma.hbm_to_vmem [thread:$0]  %s1405_s7, 256, %s109_s19, [#allocation16], %s1171_s28, %s1171_s28, %s1172_s29  }
  0x4b   :  { %s1002_s13 = scalar_lea.hbm %s1398_s0, 512 }
  0x4c   :  { %p1003_p4 = scmp.ne.s32.totalorder %s1398_s0, %s1002_s13  ;;  %p1006_p5 = scmp.lt.u32.totalorder %s1002_s13, %s1398_s0 }
  0x4e   :  { %p1008_p6 = pnand %p1006_p5, %p1003_p4 }
  0x50   :  { %1011 = shalt.err (!%p1008_p6)
}
  0x51   :  { %s1012_s18 = scalar_lea.vmem %s31_s22, 512  ;;  %p1017_p8 = scmp.lt.s32.totalorder %s31_s22, %s31_s22 }
  0x52   :  { %p1013_p7 = scmp.ne.s32.totalorder %s31_s22, %s1012_s18  ;;  %p1018_p9 = scmp.lt.s32.totalorder %s1012_s18, %s1012_s18 }
  0x54   :  { %p1019_p10 = por %p1018_p9, %p1017_p8 }
  0x56   :  { %p1020_p11 = pnand %p1019_p10, %p1013_p7 }
  0x58   :  { %1023 = shalt.err (!%p1020_p11)
}
  0x59   :  { %s1177_s7 = smov 128   ;;  %s1178_s28 = smov 8  }
  0x5a   :  { %36 = dma.hbm_to_vmem [thread:$0]  %s1398_s0, 512, %s31_s22, [#allocation4], %s1177_s7, %s1177_s7, %s1178_s28  }
  0x5b   :  { %s1179_s21 = smov [#allocation8]   ;;  %s1180_s24 = smov [#allocation11]  }
  0x5c   :  { %s55_s23 = sshll.u32 %s1179_s21, 4  ;;  %s77_s1 = sshll.u32 %s1180_s24, 4  ;;  %s56_s23 = int_to_ptr.vmem [resolvable:$true] %s55_s23  ;;  %s78_s1 = int_to_ptr.vmem [resolvable:$true] %s77_s1 }
  0x5d   :  { %s1024_s10 = scalar_lea.hbm %s1400_s2, 16 }
  0x5e   :  { %p1025_p12 = scmp.ne.s32.totalorder %s1400_s2, %s1024_s10  ;;  %p1028_p13 = scmp.lt.u32.totalorder %s1024_s10, %s1400_s2 }
  0x60   :  { %p1030_p0 = pnand %p1028_p13, %p1025_p12 }
  0x62   :  { %1033 = shalt.err (!%p1030_p0)
}
  0x63   :  { %s1034_s0 = scalar_lea.vmem %s56_s23, 16  ;;  %s1038_s22 = scalar_lea.vmem %s56_s23, 32 }
  0x64   :  { %p1035_p1 = scmp.ne.s32.totalorder %s56_s23, %s1034_s0  ;;  %p1039_p2 = scmp.lt.s32.totalorder %s56_s23, %s56_s23 }
  0x65   :  { %p1040_p3 = scmp.lt.s32.totalorder %s1038_s22, %s1034_s0 }
  0x67   :  { %p1041_p4 = por %p1040_p3, %p1039_p2 }
  0x69   :  { %p1042_p5 = pnand %p1041_p4, %p1035_p1 }
  0x6b   :  { %1045 = shalt.err (!%p1042_p5)
}
  0x6c   :  { %58 = dma.hbm_to_vmem [thread:$0]  %s1400_s2, 16, %s56_s23, [#allocation7]  }
  0x6d   :  { %s1046_s17 = scalar_lea.hbm %s1402_s4, 16 }
  0x6e   :  { %p1047_p6 = scmp.ne.s32.totalorder %s1402_s4, %s1046_s17  ;;  %p1050_p7 = scmp.lt.u32.totalorder %s1046_s17, %s1402_s4 }
  0x70   :  { %p1052_p8 = pnand %p1050_p7, %p1047_p6 }
  0x72   :  { %1055 = shalt.err (!%p1052_p8)
}
  0x73   :  { %s1056_s19 = scalar_lea.vmem %s78_s1, 16  ;;  %s1060_s21 = scalar_lea.vmem %s78_s1, 32 }
  0x74   :  { %p1057_p9 = scmp.ne.s32.totalorder %s78_s1, %s1056_s19  ;;  %p1061_p10 = scmp.lt.s32.totalorder %s78_s1, %s78_s1 }
  0x75   :  { %p1062_p11 = scmp.lt.s32.totalorder %s1060_s21, %s1056_s19 }
  0x77   :  { %p1063_p12 = por %p1062_p11, %p1061_p10 }
  0x79   :  { %p1064_p13 = pnand %p1063_p12, %p1057_p9 }
  0x7b   :  { %1067 = shalt.err (!%p1064_p13)
}
  0x7c   :  { %80 = dma.hbm_to_vmem [thread:$0]  %s1402_s4, 16, %s78_s1, [#allocation10]  }
  0x7d   :  { %s1181_s24 = smov [#allocation14]   ;;  %s1182_s25 = smov [#allocation17]  }
  0x7e   :  { %s99_s20 = sshll.u32 %s1181_s24, 4  ;;  %s121_s10 = sshll.u32 %s1182_s25, 4  ;;  %s100_s20 = int_to_ptr.vmem [resolvable:$true] %s99_s20  ;;  %s122_s10 = int_to_ptr.vmem [resolvable:$true] %s121_s10 }
  0x7f   :  { %s1068_s16 = scalar_lea.hbm %s1404_s6, 16 }
  0x80   :  { %p1069_p0 = scmp.ne.s32.totalorder %s1404_s6, %s1068_s16  ;;  %p1072_p1 = scmp.lt.u32.totalorder %s1068_s16, %s1404_s6 }
  0x82   :  { %p1074_p2 = pnand %p1072_p1, %p1069_p0 }
  0x84   :  { %1077 = shalt.err (!%p1074_p2)
}
  0x85   :  { %s1078_s4 = scalar_lea.vmem %s100_s20, 16  ;;  %s1082_s1 = scalar_lea.vmem %s100_s20, 32 }
  0x86   :  { %p1079_p3 = scmp.ne.s32.totalorder %s100_s20, %s1078_s4  ;;  %p1083_p4 = scmp.lt.s32.totalorder %s100_s20, %s100_s20 }
  0x87   :  { %p1084_p5 = scmp.lt.s32.totalorder %s1082_s1, %s1078_s4 }
  0x89   :  { %p1085_p6 = por %p1084_p5, %p1083_p4 }
  0x8b   :  { %p1086_p7 = pnand %p1085_p6, %p1079_p3 }
  0x8d   :  { %1089 = shalt.err (!%p1086_p7)
}
  0x8e   :  { %102 = dma.hbm_to_vmem [thread:$0]  %s1404_s6, 16, %s100_s20, [#allocation13]  }
  0x8f   :  { %s1090_s3 = scalar_lea.hbm %s1406_s8, 16 }
  0x90   :  { %p1091_p8 = scmp.ne.s32.totalorder %s1406_s8, %s1090_s3  ;;  %p1094_p9 = scmp.lt.u32.totalorder %s1090_s3, %s1406_s8 }
  0x92   :  { %p1096_p10 = pnand %p1094_p9, %p1091_p8 }
  0x94   :  { %1099 = shalt.err (!%p1096_p10)
}
  0x95   :  { %s1100_s21 = scalar_lea.vmem %s122_s10, 16  ;;  %s1104_s2 = scalar_lea.vmem %s122_s10, 32 }
  0x96   :  { %p1101_p11 = scmp.ne.s32.totalorder %s122_s10, %s1100_s21  ;;  %p1105_p12 = scmp.lt.s32.totalorder %s122_s10, %s122_s10 }
  0x97   :  { %p1106_p13 = scmp.lt.s32.totalorder %s1104_s2, %s1100_s21 }
  0x99   :  { %p1107_p0 = por %p1106_p13, %p1105_p12 }
  0x9b   :  { %p1108_p1 = pnand %p1107_p0, %p1101_p11 }
  0x9d   :  { %1111 = shalt.err (!%p1108_p1)
}
  0x9e   :  { %124 = dma.hbm_to_vmem [thread:$0]  %s1406_s8, 16, %s122_s10, [#allocation16]  }
  0x9f   :  { %s1183_s24 = smov [#allocation18]   ;;  %s1112_s5 = scalar_lea.hbm %s1407_s9, 16 }
  0xa0   :  { %s131_s20 = sshll.u32 %s1183_s24, 4  ;;  %p1113_p2 = scmp.ne.s32.totalorder %s1407_s9, %s1112_s5  ;;  %s132_s20 = int_to_ptr.vmem [resolvable:$true] %s131_s20 }
  0xa1   :  { %p1116_p3 = scmp.lt.u32.totalorder %s1112_s5, %s1407_s9 }
  0xa3   :  { %p1118_p4 = pnand %p1116_p3, %p1113_p2 }
  0xa5   :  { %1121 = shalt.err (!%p1118_p4)
}
  0xa6   :  { %s1122_s30 = scalar_lea.vmem %s132_s20, 16  ;;  %s1126_s8 = scalar_lea.vmem %s132_s20, 32 }
  0xa7   :  { %p1123_p5 = scmp.ne.s32.totalorder %s132_s20, %s1122_s30  ;;  %p1127_p6 = scmp.lt.s32.totalorder %s132_s20, %s132_s20 }
  0xa8   :  { %p1128_p7 = scmp.lt.s32.totalorder %s1126_s8, %s1122_s30 }
  0xaa   :  { %p1129_p8 = por %p1128_p7, %p1127_p6 }
  0xac   :  { %p1130_p9 = pnand %p1129_p8, %p1123_p5 }
  0xae   :  { %1133 = shalt.err (!%p1130_p9)
}
  0xaf   :  { %134 = dma.hbm_to_vmem [thread:$0]  %s1407_s9, 16, %s132_s20, [#allocation19]  }
  0xb0   :  { %1156 = dma.done.wait [#allocation4], 512  }
  0xb1   :  { %1157 = vsyncadd [#allocation4], 4294966784 }
  0xb2   :  { %1158 = dma.done.wait [#allocation7], 1040  }
  0xb3   :  { %1159 = vsyncadd [#allocation7], 4294966256 }
  0xb4   :  { %1160 = dma.done.wait [#allocation10], 1040  }
  0xb5   :  { %1161 = vsyncadd [#allocation10], 4294966256 }
  0xb6   :  { %1162 = dma.done.wait [#allocation13], 1040  }
  0xb7   :  { %1163 = vsyncadd [#allocation13], 4294966256 }
  0xb8   :  { %1164 = dma.done.wait [#allocation16], 272  }
  0xb9   :  { %1165 = vsyncadd [#allocation16], 4294967024 }
  0xba   :  { %1166 = dma.done.wait [#allocation19], 16  }
  0xbb   :  { %1167 = vsyncadd [#allocation19], 4294967280  ;;  %v872_v1 = vld [vmem:[#allocation6] sm:$0xff]   ;;  %v873_v2 = vld [vmem:[#allocation6 + $0x8] sm:$0xff]   ;;  %vm571_vm0 = vcmask 261120   ;;  %vm642_vm1 = vcmask 64512  }
  0xbc   :  { %789 = vmatprep.subr.bf16.mxu0 %v872_v1  ;;  %v874_v3 = vld [vmem:[#allocation6 + $0x10] sm:$0xff]   ;;  %v875_v4 = vld [vmem:[#allocation6 + $0x18] sm:$0xff]   ;;  %v168_v5 = vld [vmem:[#allocation3] sm:$0xff]  ;;  %vm694_vm2 = vcmask 7168   ;;  %s1184_s9 = smov [#allocation20]  }
  0xbd   :  { %790 = vmatpush3.bf16.msra.mxu0 %v872_v1  ;;  %v169_v6 = vld [vmem:[#allocation3 + $0x8] sm:$0xff]  ;;  %v876_v10 = vld [vmem:[#allocation6 + $0x20] sm:$0xff]   ;;  %v882_v11 = vld [vmem:[#allocation9 + $0x10] sm:$0xff]   ;;  %s704_s1 = sshll.u32 %s1184_s9, 4  ;;  %s705_s1 = int_to_ptr.vmem [resolvable:$true] %s704_s1 }
  0xbe   :  { %791 = vmatprep.subr.bf16.mxu0 %v873_v2  ;;  %v172_v7 = vpack.c.bf16 %v169_v6, %v168_v5  ;;  %v880_v8 = vld [vmem:[#allocation9] sm:$0xff]   ;;  %v881_v9 = vld [vmem:[#allocation9 + $0x8] sm:$0xff]   ;;  %v883_v13 = vld [vmem:[#allocation9 + $0x18] sm:$0xff]   ;;  %s1134_s12 = scalar_lea.vmem %s705_s1, 512  ;;  %p1139_p11 = scmp.lt.s32.totalorder %s705_s1, %s705_s1 }
  0xbf   :  { %809 = vmatprep.subr.bf16.mxu1 %v880_v8  ;;  %v877_v12 = vld [vmem:[#allocation6 + $0x28] sm:$0xff]   ;;  %v878_v14 = vld [vmem:[#allocation6 + $0x30] sm:$0xff]   ;;  %v879_v16 = vld [vmem:[#allocation6 + $0x38] sm:$0xff]   ;;  %p1135_p10 = scmp.ne.s32.totalorder %s705_s1, %s1134_s12  ;;  %p1140_p12 = scmp.lt.s32.totalorder %s1134_s12, %s1134_s12 }
  0xc0   :  { %805 = vmatprep.mubr.bf16.mxu0 %v172_v7  ;;  %810 = vmatpush3.bf16.msra.mxu1 %v880_v8  ;;  %v884_v15 = vld [vmem:[#allocation9 + $0x20] sm:$0xff]   ;;  %v885_v17 = vld [vmem:[#allocation9 + $0x28] sm:$0xff]   ;;  %v171_v19 = vld [vmem:[#allocation3 + $0x18] sm:$0xff] }
  0xc1   :  { %792 = vmatpush3.bf16.msra.mxu0 %v873_v2  ;;  %811 = vmatprep.subr.bf16.mxu1 %v881_v9  ;;  %v170_v18 = vld [vmem:[#allocation3 + $0x10] sm:$0xff]  ;;  %v887_v22 = vld [vmem:[#allocation9 + $0x38] sm:$0xff]   ;;  %v888_v23 = vld [vmem:[#allocation12] sm:$0xff]   ;;  %p1141_p13 = por %p1140_p12, %p1139_p11 }
  0xc2   :  { %793 = vmatprep.subr.bf16.mxu0 %v874_v3  ;;  %v173_v20 = vpack.c.bf16 %v171_v19, %v170_v18  ;;  %v886_v21 = vld [vmem:[#allocation9 + $0x30] sm:$0xff]   ;;  %v891_v26 = vld [vmem:[#allocation12 + $0x18] sm:$0xff]   ;;  %v892_v27 = vld [vmem:[#allocation12 + $0x20] sm:$0xff]  }
  0xc3   :  { %v889_v24 = vld [vmem:[#allocation12 + $0x8] sm:$0xff]   ;;  %v890_v25 = vld [vmem:[#allocation12 + $0x10] sm:$0xff]   ;;  %v721_v29 = vld [vmem:[#allocation8] ss:$0 sm:$0xff]  ;;  %p1142_p0 = pnand %p1141_p13, %p1135_p10 }
  0xc4   :  { %812 = vmatpush3.bf16.msra.mxu1 %v881_v9  ;;  %v893_v28 = vld [vmem:[#allocation12 + $0x28] sm:$0xff]   ;;  %v894_v44 = vld [vmem:[#allocation12 + $0x30] sm:$0xff]   ;;  %v895_v45 = vld [vmem:[#allocation12 + $0x38] sm:$0xff]  }
  0xc5   :  { %794 = vmatpush3.bf16.msra.mxu0 %v874_v3  ;;  %813 = vmatprep.subr.bf16.mxu1 %v882_v11  ;;  %v730_v47 = vld [vmem:[#allocation11] ss:$0 sm:$0xff]  ;;  %v896_v57 = vld [vmem:[#allocation15] sm:$0xff]   ;;  %v897_v58 = vld [vmem:[#allocation15 + $0x8] sm:$0xff]  }
  0xc6   :  { %795 = vmatprep.subr.bf16.mxu0 %v875_v4  ;;  %v739_v59 = vld [vmem:[#allocation14] ss:$0 sm:$0xff] }
  0xc8   :  { %814 = vmatpush3.bf16.msra.mxu1 %v882_v11 }
  0xc9   :  { %796 = vmatpush3.bf16.msra.mxu0 %v875_v4  ;;  %815 = vmatprep.subr.bf16.mxu1 %v883_v13 }
  0xca   :  { %797 = vmatprep.subr.bf16.mxu0 %v876_v10 }
  0xcc   :  { %816 = vmatpush3.bf16.msra.mxu1 %v883_v13 }
  0xcd   :  { %798 = vmatpush3.bf16.msra.mxu0 %v876_v10  ;;  %817 = vmatprep.subr.bf16.mxu1 %v884_v15  ;;  %v748_v10 = vld [vmem:[#allocation17] ss:$0 sm:$0xff] }
  0xce   :  { %799 = vmatprep.subr.bf16.mxu0 %v877_v12 }
  0xd0   :  { %818 = vmatpush3.bf16.msra.mxu1 %v884_v15 }
  0xd1   :  { %800 = vmatpush3.bf16.msra.mxu0 %v877_v12  ;;  %819 = vmatprep.subr.bf16.mxu1 %v885_v17 }
  0xd2   :  { %801 = vmatprep.subr.bf16.mxu0 %v878_v14 }
  0xd4   :  { %820 = vmatpush3.bf16.msra.mxu1 %v885_v17 }
  0xd5   :  { %802 = vmatpush3.bf16.msra.mxu0 %v878_v14  ;;  %821 = vmatprep.subr.bf16.mxu1 %v886_v21 }
  0xd6   :  { %803 = vmatprep.subr.bf16.mxu0 %v879_v16 }
  0xd8   :  { %822 = vmatpush3.bf16.msra.mxu1 %v886_v21 }
  0xd9   :  { %804 = vmatpush3.bf16.msra.mxu0 %v879_v16  ;;  %823 = vmatprep.subr.bf16.mxu1 %v887_v22  ;;  %v753_v16 = vld [vmem:[#allocation18] ss:$0 sm:$0xff] }
  0xda   :  { %829 = vmatprep.subr.bf16.mxu0 %v888_v23 }
  0xdc   :  { %806 = vmatmul.mubr.bf16.vlgmr.msra.gmra.mrb[0].mxu0 %v173_v20  ;;  %824 = vmatpush3.bf16.msra.mxu1 %v887_v22 }
  0xdd   :  { %830 = vmatpush3.bf16.msra.mxu0 %v888_v23  ;;  %849 = vmatprep.subr.bf16.mxu1 %v896_v57 }
  0xde   :  { %831 = vmatprep.subr.bf16.mxu0 %v889_v24 }
  0xe1   :  { %832 = vmatpush3.bf16.msra.mxu0 %v889_v24 }
  0xe2   :  { %833 = vmatprep.subr.bf16.mxu0 %v890_v25 }
  0xe5   :  { %834 = vmatpush3.bf16.msra.mxu0 %v890_v25 }
  0xe6   :  { %835 = vmatprep.subr.bf16.mxu0 %v891_v26 }
  0xe9   :  { %836 = vmatpush3.bf16.msra.mxu0 %v891_v26 }
  0xea   :  { %837 = vmatprep.subr.bf16.mxu0 %v892_v27 }
  0xed   :  { %838 = vmatpush3.bf16.msra.mxu0 %v892_v27 }
  0xee   :  { %839 = vmatprep.subr.bf16.mxu0 %v893_v28 }
  0xf1   :  { %840 = vmatpush3.bf16.msra.mxu0 %v893_v28 }
  0xf2   :  { %841 = vmatprep.subr.bf16.mxu0 %v894_v44 }
  0xf5   :  { %842 = vmatpush3.bf16.msra.mxu0 %v894_v44 }
  0xf6   :  { %843 = vmatprep.subr.bf16.mxu0 %v895_v45 }
  0xf9   :  { %844 = vmatpush3.bf16.msra.mxu0 %v895_v45 }
 0x1af   :  { %v807_v30 = vpop.f32.mrb[0].mxu0 }
 0x1b0   :  { %v288_v31 = vadd.f32 %v807_v30, %v721_v29  ;;  %v279_v32 = vpop.f32.mrb[1].mxu0 }
 0x1b1   :  { %v280_v33 = vadd.f32 %v721_v29, %v279_v32  ;;  %v808_v34 = vpop.f32.mrb[2].mxu0  ;;  %v754_v32 = vld [vmem:[#allocation2] ss:$0 sm:$0xff] }
 0x1b2   :  { %v291_v35 = vadd.f32 %v808_v34, %v721_v29  ;;  %v282_v36 = vpop.f32.mrb[3].mxu0  ;;  %v296_v38 = vmax.f32 %v288_v31, 0.0 }
 0x1b3   :  { %v283_v37 = vadd.f32 %v721_v29, %v282_v36  ;;  %v294_v40 = vmax.f32 %v280_v33, 0.0 }
 0x1b4   :  { %v297_v39 = vmax.f32 %v291_v35, 0.0 }
 0x1b5   :  { %v295_v41 = vmax.f32 %v283_v37, 0.0 }
 0x1b6   :  { %v299_v42 = vpack.c.bf16 %v297_v39, %v296_v38 }
 0x1b7   :  { %v298_v43 = vpack.c.bf16 %v295_v41, %v294_v40 }
 0x1b9   :  { %825 = vmatprep.mubr.bf16.mxu1 %v298_v43 }
 0x1ba   :  { %826 = vmatmul.mubr.bf16.vlgmr.msra.gmra.mrb[0].mxu1 %v299_v42 }
 0x1bb   :  { %850 = vmatpush3.bf16.msra.mxu1 %v896_v57 }
 0x1bc   :  { %851 = vmatprep.subr.bf16.mxu1 %v897_v58 }
 0x1bf   :  { %852 = vmatpush3.bf16.msra.mxu1 %v897_v58 }
 0x28d   :  { %v827_v46 = vpop.f32.mrb[0].mxu1 }
 0x28e   :  { %v405_v48 = vpop.f32.mrb[1].mxu1  ;;  %v414_v50 = vadd.f32 %v827_v46, %v730_v47 }
 0x28f   :  { %v828_v49 = vpop.f32.mrb[2].mxu1  ;;  %v406_v53 = vadd.f32 %v730_v47, %v405_v48 }
 0x290   :  { %v417_v51 = vadd.f32 %v828_v49, %v730_v47  ;;  %v408_v52 = vpop.f32.mrb[3].mxu1 }
 0x291   :  { %v409_v54 = vadd.f32 %v730_v47, %v408_v52 }
 0x292   :  { %v421_v55 = vpack.c.bf16 %v417_v51, %v414_v50 }
 0x293   :  { %v420_v56 = vpack.c.bf16 %v409_v54, %v406_v53 }
 0x295   :  { %845 = vmatprep.mubr.bf16.mxu0 %v420_v56 }
 0x296   :  { %846 = vmatmul.mubr.bf16.vlgmr.msra.gmra.mrb[4].mxu0 %v421_v55 }
 0x369   :  { %v847_v60 = vpop.f32.mrb[4].mxu0 }
 0x36a   :  { %v536_v61 = vadd.f32 %v847_v60, %v739_v59  ;;  %v527_v62 = vpop.f32.mrb[5].mxu0 }
 0x36b   :  { %v528_v63 = vadd.f32 %v739_v59, %v527_v62  ;;  %v848_v0 = vpop.f32.mrb[6].mxu0 }
 0x36c   :  { %v539_v1 = vadd.f32 %v848_v0, %v739_v59  ;;  %v530_v2 = vpop.f32.mrb[7].mxu0  ;;  %v544_v4 = vmax.f32 %v536_v61, 0.0 }
 0x36d   :  { %v531_v3 = vadd.f32 %v739_v59, %v530_v2  ;;  %v542_v6 = vmax.f32 %v528_v63, 0.0 }
 0x36e   :  { %v545_v5 = vmax.f32 %v539_v1, 0.0 }
 0x36f   :  { %v543_v7 = vmax.f32 %v531_v3, 0.0 }
 0x370   :  { %v547_v8 = vpack.c.bf16 %v545_v5, %v544_v4 }
 0x371   :  { %v546_v9 = vpack.c.bf16 %v543_v7, %v542_v6 }
 0x373   :  { %853 = vmatprep.mubr.msk.bf16.mxu1 %vm571_vm0, %v546_v9 }
 0x374   :  { %854 = vmatmul.mubr.msk.bf16.vlgmr.msra.gmra.mrb[4].mxu1 %vm571_vm0, %v547_v8 }
 0x447   :  { %v855_v11 = vpop.f32.mrb[4].mxu1 }
 0x448   :  { %v621_v12 = vadd.f32 %v855_v11, %v748_v10  ;;  %v612_v13 = vpop.f32.mrb[5].mxu1 }
 0x449   :  { %v613_v14 = vadd.f32 %v748_v10, %v612_v13  ;;  %v856_v15 = vpop.f32.mrb[6].mxu1 }
 0x44a   :  { %v629_v17 = vmax.f32 %v621_v12, 0.0  ;;  %v624_v18 = vadd.f32 %v856_v15, %v748_v10  ;;  %v615_v19 = vpop.f32.mrb[7].mxu1 }
 0x44b   :  { %v627_v20 = vmax.f32 %v613_v14, 0.0  ;;  %v616_v21 = vadd.f32 %v748_v10, %v615_v19 }
 0x44c   :  { %v630_v22 = vmax.f32 %v624_v18, 0.0  ;;  %v640_v23 = vmul.f32 %v753_v16, %v629_v17 }
 0x44d   :  { %v628_v24 = vmax.f32 %v616_v21, 0.0  ;;  %v638_v25 = vmul.f32 %v753_v16, %v627_v20 }
 0x44e   :  { %v649_v26 = vsel %vm642_vm1, %v640_v23, 0.0  ;;  %v641_v27 = vmul.f32 %v753_v16, %v630_v22 }
 0x44f   :  { %650 = vadd.xlane.f32.xlu1 %v649_v26  ;;  %v643_v28 = vsel %vm642_vm1, %v638_v25, 0.0  ;;  %v639_v29 = vmul.f32 %v753_v16, %v628_v24 }
 0x450   :  { %644 = vadd.xlane.f32.xlu0 %v643_v28  ;;  %v652_v30 = vsel %vm642_vm1, %v641_v27, 0.0 }
 0x451   :  { %v646_v31 = vsel %vm642_vm1, %v639_v29, 0.0 }
 0x453   :  { %653 = vadd.xlane.f32.xlu1 %v652_v30 }
 0x454   :  { %647 = vadd.xlane.f32.xlu0 %v646_v31 }
 0x4dc   :  { %v651_v33 = vpop.xlane.xlu1 %650 }
 0x4dd   :  { %v664_v34 = vadd.f32 %v754_v32, %v651_v33  ;;  %v645_v35 = vpop.xlane.xlu0 %644 }
 0x4de   :  { %v662_v36 = vadd.f32 %v754_v32, %v645_v35 }
 0x4df   :  { %v668_v37 = vsub.f32 0.0, %v664_v34 }
 0x4e0   :  { %v666_v38 = vsub.f32 0.0, %v662_v36  ;;  %v654_v39 = vpop.xlane.xlu1 %653 }
 0x4e1   :  { %v674_v40 = vmul.f32 1.442695, %v668_v37  ;;  %v665_v41 = vadd.f32 %v754_v32, %v654_v39  ;;  %v648_v42 = vpop.xlane.xlu0 %647 }
 0x4e2   :  { %v670_v43 = vmul.f32 1.442695, %v666_v38  ;;  %v663_v44 = vadd.f32 %v754_v32, %v648_v42 }
 0x4e3   :  { %898 = vpow2.f32 %v674_v40  ;;  %v669_v45 = vsub.f32 0.0, %v665_v41 }
 0x4e4   :  { %900 = vpow2.f32 %v670_v43  ;;  %v667_v46 = vsub.f32 0.0, %v663_v44 }
 0x4e5   :  { %v676_v47 = vmul.f32 1.442695, %v669_v45 }
 0x4e6   :  { %v672_v48 = vmul.f32 1.442695, %v667_v46 }
 0x4e7   :  { %902 = vpow2.f32 %v676_v47 }
 0x4e8   :  { %904 = vpow2.f32 %v672_v48 }
 0x4ed   :  { %v899_v49 = vpop.eup %898 }
 0x4ee   :  { %v901_v50 = vpop.eup %900  ;;  %v680_v51 = vadd.f32 1.0, %v899_v49 }
 0x4ef   :  { %v678_v52 = vadd.f32 1.0, %v901_v50 }
 0x4f0   :  { %906 = vrcp.f32 %v680_v51 }
 0x4f1   :  { %v903_v53 = vpop.eup %902  ;;  %908 = vrcp.f32 %v678_v52 }
 0x4f2   :  { %v905_v54 = vpop.eup %904  ;;  %v681_v55 = vadd.f32 1.0, %v903_v53 }
 0x4f3   :  { %v679_v56 = vadd.f32 1.0, %v905_v54 }
 0x4f4   :  { %910 = vrcp.f32 %v681_v55 }
 0x4f5   :  { %912 = vrcp.f32 %v679_v56 }
 0x4fa   :  { %v907_v57 = vpop.eup %906 }
 0x4fb   :  { %v909_v58 = vpop.eup %908  ;;  %v688_v59 = vmax.f32 %v907_v57, 0.0 }
 0x4fc   :  { %v686_v60 = vmax.f32 %v909_v58, 0.0 }
 0x4fd   :  { %v692_v61 = vmin.f32 %v688_v59, 1.0 }
 0x4fe   :  { %v911_v62 = vpop.eup %910  ;;  %v690_v63 = vmin.f32 %v686_v60, 1.0 }
 0x4ff   :  { %v913_v0 = vpop.eup %912  ;;  %v689_v1 = vmax.f32 %v911_v62, 0.0  ;;  %697 = vst.msk [vmem:[#allocation20 + $0x10] sm:$0xff] %vm694_vm2, %v692_v61 }
 0x500   :  { %v687_v2 = vmax.f32 %v913_v0, 0.0  ;;  %695 = vst.msk [vmem:[#allocation20] sm:$0xff] %vm694_vm2, %v690_v63 }
 0x501   :  { %v693_v3 = vmin.f32 %v689_v1, 1.0 }
 0x502   :  { %v691_v4 = vmin.f32 %v687_v2, 1.0 }
 0x503   :  { %698 = vst.msk [vmem:[#allocation20 + $0x18] sm:$0xff] %vm694_vm2, %v693_v3 }
 0x504   :  { %696 = vst.msk [vmem:[#allocation20 + $0x8] sm:$0xff] %vm694_vm2, %v691_v4 }
 0x505   :  { %1145 = shalt.err (!%p1142_p0)
}
 0x506   :  { %s1146_s17 = scalar_lea.hbm %s1409_s11, 512 }
 0x507   :  { %p1147_p1 = scmp.ne.s32.totalorder %s1409_s11, %s1146_s17  ;;  %p1150_p2 = scmp.lt.u32.totalorder %s1146_s17, %s1409_s11 }
 0x509   :  { %p1152_p3 = pnand %p1150_p2, %p1147_p1 }
 0x50b   :  { %1155 = shalt.err (!%p1152_p3)
}
 0x50c   :  { %710 = dma.vmem_to_hbm [thread:$0]  %s705_s1, 512, %s1409_s11, [#allocation5], %s1177_s7, %s1177_s7, %s1178_s28  }
 0x50d   :  { %1168 = dma.done.wait [#allocation5], 512  }
 0x50e   :  { %1169 = vsyncadd [#allocation5], 4294966784 }
 0x50f   :  { %714 = vsyncpa [#allocation4], 1 }
 0x510   :  { %715 = vsyncpa [#allocation7], 1 }
 0x511   :  { %716 = vsyncpa [#allocation10], 1 }
 0x512   :  { %717 = vsyncpa [#allocation13], 1 }
 0x513   :  { %718 = vsyncpa [#allocation16], 1 }
 0x514   :  { %719 = vsyncpa [#allocation19], 1 }
 0x515   :  { %720 = vsyncpa [#allocation5], 1 }

</bundles_post_ra>
